<compile_context>
chip_gen: v7x
topology: tpu7x:2x2x1
jax: 0.10.0
libtpu: 0.0.40
codegen_flags: <defaults>
</compile_context>

<pallas_src>
import functools

import jax
import jax.numpy as jnp
from jax.experimental import pallas as pl
from jax.experimental.pallas import tpu as pltpu


# ----------------------------------------------------------------------------
# Pallas kernels
# ----------------------------------------------------------------------------
def _project_kernel(x_ref, w1i_ref, w1j_ref, b1_ref, hi_ref, hj_ref):
    """Per-layer hoisted projections: h_i = x@W1i + b1, h_j = x@W1j."""
    x = x_ref[...]                                                # [Tn, F]
    hi_ref[...] = (jnp.dot(x, w1i_ref[...],
                           preferred_element_type=jnp.float32)
                   + b1_ref[...]).astype(hi_ref.dtype)
    hj_ref[...] = jnp.dot(x, w1j_ref[...],
                          preferred_element_type=jnp.float32).astype(hj_ref.dtype)


def _gnn_layer_kernel(apply_relu,
                      hi_ref, hj_ref, adj_ref, deg_ref,
                      w2_ref, b2_ref, w3_ref, b3_ref,
                      o_ref, acc_ref):
    """One GNN_Layer: per-(target,source)-pair MLP, masked sum aggregation.

    Grid = (target tiles [parallel], source tiles [arbitrary]).
    acc_ref is a [TI, H] VMEM accumulator carried over the source axis;
    the W3 contraction (and the deg-scaled b3) is applied only at the last
    source step.
    """
    tj = pl.program_id(1)

    @pl.when(tj == 0)
    def _():
        acc_ref[...] = jnp.zeros_like(acc_ref)

    hi = hi_ref[...]                  # [TI, H]  target-tile projection (b1 folded in)
    hj = hj_ref[...]                  # [TJ, H]  source-tile projection
    adj = adj_ref[...]                # [TI, TJ] edge counts (dst x src)
    TI, TJ = adj.shape
    H = hi.shape[1]

    # MLP layer 1 (cat-Linear factored + b1 already added) + ReLU
    h1 = jnp.maximum(hi[:, None, :] + hj[None, :, :], 0.0).reshape(TI * TJ, H)
    # MLP layer 2 + ReLU
    h2 = jnp.maximum(
        jnp.dot(h1, w2_ref[...], preferred_element_type=jnp.float32) + b2_ref[...],
        0.0)
    # aggr='add': adjacency-count-weighted reduction over sources,
    # accumulated in the H-dim *before* the W3 contraction (hoisted).
    acc_ref[...] += jnp.sum(adj[:, :, None] * h2.reshape(TI, TJ, H), axis=1)

    @pl.when(tj == pl.num_programs(1) - 1)
    def _():
        # out = agg @ W3 + deg * b3   (bit-equivalent to summing per-pair b3)
        out = (jnp.dot(acc_ref[...], w3_ref[...],
                       preferred_element_type=jnp.float32)
               + deg_ref[...] * b3_ref[...])
        if apply_relu:                # x = x.relu() between layers
            out = jnp.maximum(out, 0.0)
        o_ref[...] = out.astype(o_ref.dtype)


def _pool_linear_kernel(pool_ref, x_ref, w_ref, b_ref, o_ref):
    """global_mean_pool (normalized one-hot matmul) + final Linear (padded)."""
    pooled = jnp.dot(pool_ref[...], x_ref[...],
                     preferred_element_type=jnp.float32)          # [G, H]
    o_ref[...] = (jnp.dot(pooled, w_ref[...],
                          preferred_element_type=jnp.float32)
                  + b_ref[...]).astype(o_ref.dtype)


# ----------------------------------------------------------------------------
# Wrappers
# ----------------------------------------------------------------------------
def _pick_tile(n, cap=128):
    # Single grid step when the dimension is small; otherwise cap the tile so
    # the [TI*TJ, H] f32 intermediates stay well under VMEM (v7x: 64 MiB).
    if n <= cap:
        return n
    assert n % cap == 0, f"dimension {n} must be a multiple of {cap} (pad it)"
    return cap


def project_xw1(x, w1i, w1j, b1, tile_n):
    N, F = x.shape
    H = w1i.shape[1]
    return pl.pallas_call(
        _project_kernel,
        out_shape=(jax.ShapeDtypeStruct((N, H), jnp.float32),
                   jax.ShapeDtypeStruct((N, H), jnp.float32)),
        grid=(N // tile_n,),
        in_specs=[
            pl.BlockSpec((tile_n, F), lambda n: (n, 0)),   # x tile
            pl.BlockSpec((F, H),      lambda n: (0, 0)),   # W1 (x_i half)
            pl.BlockSpec((F, H),      lambda n: (0, 0)),   # W1 (x_j half)
            pl.BlockSpec((1, H),      lambda n: (0, 0)),   # b1
        ],
        out_specs=(pl.BlockSpec((tile_n, H), lambda n: (n, 0)),
                   pl.BlockSpec((tile_n, H), lambda n: (n, 0))),
        compiler_params=pltpu.CompilerParams(
            dimension_semantics=("parallel",)),
    )(x, w1i, w1j, b1)


def gnn_layer(x, adj, deg, params, apply_relu, *, tile_i=None, tile_j=None):
    N, _ = x.shape
    w1i, w1j, b1, w2, b2, w3, b3 = params
    H = w1i.shape[1]
    O = w3.shape[1]

    tile_i = _pick_tile(N) if tile_i is None else tile_i
    tile_j = _pick_tile(N) if tile_j is None else tile_j
    assert N % tile_i == 0 and N % tile_j == 0

    # Hoisted first projection (computed once per layer, not per target tile).
    hi, hj = project_xw1(x, w1i, w1j, b1, tile_n=tile_i)

    kernel = functools.partial(_gnn_layer_kernel, apply_relu)
    # NOTE: grid-invariant weights are still double-buffered by default; with
    # H<=256 this is small.  For big N, raise vmem_limit_bytes and/or use
    # pl.Buffered(1) on the invariant specs to reclaim headroom.
    return pl.pallas_call(
        kernel,
        out_shape=jax.ShapeDtypeStruct((N, O), jnp.float32),
        grid=(N // tile_i, N // tile_j),
        in_specs=[
            pl.BlockSpec((tile_i, H),      lambda i, j: (i, 0)),   # h_i tile
            pl.BlockSpec((tile_j, H),      lambda i, j: (j, 0)),   # h_j tile
            pl.BlockSpec((tile_i, tile_j), lambda i, j: (i, j)),   # adjacency tile
            pl.BlockSpec((tile_i, 1),      lambda i, j: (i, 0)),   # degree (row sums)
            pl.BlockSpec((H, H),           lambda i, j: (0, 0)),   # W2
            pl.BlockSpec((1, H),           lambda i, j: (0, 0)),   # b2
            pl.BlockSpec((H, O),           lambda i, j: (0, 0)),   # W3
            pl.BlockSpec((1, O),           lambda i, j: (0, 0)),   # b3
        ],
        out_specs=pl.BlockSpec((tile_i, O), lambda i, j: (i, 0)),
        scratch_shapes=[pltpu.VMEM((tile_i, H), jnp.float32)],
        compiler_params=pltpu.CompilerParams(
            dimension_semantics=("parallel", "arbitrary")),
    )(hi, hj, adj, deg, w2, b2, w3, b3)


def pool_and_classify(x, pool_mat, w, b):
    G, N = pool_mat.shape
    H = x.shape[1]
    C = w.shape[1]
    # Pad the head to a lane multiple (101 -> 128) for lane-dense stores.
    Cp = ((C + 127) // 128) * 128
    w_p = jnp.pad(w, ((0, 0), (0, Cp - C)))
    b_p = jnp.pad(b, ((0, 0), (0, Cp - C)))
    out = pl.pallas_call(
        _pool_linear_kernel,
        out_shape=jax.ShapeDtypeStruct((G, Cp), jnp.float32),
        grid=(1,),
        in_specs=[
            pl.BlockSpec((G, N),  lambda i: (0, 0)),
            pl.BlockSpec((N, H),  lambda i: (0, 0)),
            pl.BlockSpec((H, Cp), lambda i: (0, 0)),
            pl.BlockSpec((1, Cp), lambda i: (0, 0)),
        ],
        out_specs=pl.BlockSpec((G, Cp), lambda i: (0, 0)),
    )(pool_mat, x, w_p, b_p)
    return out[:, :C]


def gnn_model_forward(x, edge_index, batch, num_graphs, layer_params, head_params):
    N = x.shape[0]
    src = edge_index[0]
    dst = edge_index[1]
    # Dense edge-count adjacency A[dst, src] += 1 (handles duplicate edges).
    # TODO(synk): for large sparse graphs, replace with a CSR/edge-list gather
    # (PrefetchScalarGridSpec + pl.Element / manual DMA) to get O(E*H^2) work.
    adj = jnp.zeros((N, N), jnp.float32).at[dst, src].add(1.0)
    deg = adj.sum(axis=1, keepdims=True)      # [N, 1] edge counts per target

    num_layers = len(layer_params)
    for li, params in enumerate(layer_params):
        apply_relu = li < num_layers - 1      # x = x.relu() after all but last layer
        x = gnn_layer(x, adj, deg, params, apply_relu)

    # global_mean_pool(x, batch) as a normalized one-hot matmul
    onehot = (batch[None, :] == jnp.arange(num_graphs)[:, None]).astype(jnp.float32)
    counts = jnp.maximum(onehot.sum(axis=1, keepdims=True), 1.0)
    pool_mat = onehot / counts                # [G, N]

    w, b = head_params
    return pool_and_classify(x, pool_mat, w, b)


# ----------------------------------------------------------------------------
# Pure-JAX reference (edge-gather formulation, identical math) for sanity check
# ----------------------------------------------------------------------------
def _ref_forward(x, edge_index, batch, num_graphs, layer_params, head_params):
    N = x.shape[0]
    src, dst = edge_index[0], edge_index[1]
    num_layers = len(layer_params)
    for li, (w1i, w1j, b1, w2, b2, w3, b3) in enumerate(layer_params):
        w1 = jnp.concatenate([w1i, w1j], axis=0)
        h = jnp.concatenate([x[dst], x[src]], axis=-1)       # cat(x_i, x_j)
        h = jax.nn.relu(h @ w1 + b1)
        h = jax.nn.relu(h @ w2 + b2)
        msg = h @ w3 + b3
        x = jnp.zeros((N, w3.shape[1]), jnp.float32).at[dst].add(msg)
        if li < num_layers - 1:
            x = jax.nn.relu(x)
    onehot = (batch[None, :] == jnp.arange(num_graphs)[:, None]).astype(jnp.float32)
    pooled = (onehot @ x) / jnp.maximum(onehot.sum(axis=1, keepdims=True), 1.0)
    w, b = head_params
    return pooled @ w + b


# ----------------------------------------------------------------------------
# Deterministic parameter init (synthetic; shapes from GNN_Model.__init__)
# ----------------------------------------------------------------------------
def _init_linear(key, fan_in, fan_out):
    kw, kb = jax.random.split(key)
    bound = 1.0 / jnp.sqrt(jnp.float32(fan_in))
    w = jax.random.uniform(kw, (fan_in, fan_out), jnp.float32, -bound, bound)
    b = jax.random.uniform(kb, (1, fan_out), jnp.float32, -bound, bound)
    return w, b


def init_params(key, in_features, hidden_dim, hidden_mlp_dim, num_layers, num_classes):
    layer_params = []
    dims = [(in_features, hidden_dim)] + [(hidden_dim, hidden_dim)] * (num_layers - 1)
    for (f_in, f_out) in dims:
        key, k1, k2, k3 = jax.random.split(key, 4)
        w1, b1 = _init_linear(k1, 2 * f_in, hidden_mlp_dim)   # Linear(2*in, mlp_hid)
        w2, b2 = _init_linear(k2, hidden_mlp_dim, hidden_mlp_dim)
        w3, b3 = _init_linear(k3, hidden_mlp_dim, f_out)      # Linear(mlp_hid, out)
        layer_params.append((w1[:f_in], w1[f_in:], b1, w2, b2, w3, b3))
    key, kh = jax.random.split(key)
    head_params = _init_linear(kh, hidden_dim, num_classes)
    return layer_params, head_params


# ----------------------------------------------------------------------------
if __name__ == "__main__":
    # small shapes consistent with the module
    IN_FEATURES = 10
    HIDDEN_DIM = 128       # hidden_dim (== GNN layer out_features)
    HIDDEN_MLP_DIM = 128   # hidden_mlp_dim of the per-edge MLP
    NUM_LAYERS = 4
    NUM_CLASSES = 101
    N_NODES = 16
    NUM_GRAPHS = 2
    EDGES_PER_GRAPH = 24

    key = jax.random.PRNGKey(0)
    key, kx, ke = jax.random.split(key, 3)

    x = jax.random.normal(kx, (N_NODES, IN_FEATURES), jnp.float32)

    # two graphs of 8 nodes each, intra-graph random edges
    nodes_per_graph = N_NODES // NUM_GRAPHS
    ks, kd = jax.random.split(ke)
    src_list, dst_list = [], []
    for g in range(NUM_GRAPHS):
        ks, s_k = jax.random.split(ks)
        kd, d_k = jax.random.split(kd)
        lo = g * nodes_per_graph
        src_list.append(jax.random.randint(s_k, (EDGES_PER_GRAPH,), lo, lo + nodes_per_graph))
        dst_list.append(jax.random.randint(d_k, (EDGES_PER_GRAPH,), lo, lo + nodes_per_graph))
    edge_index = jnp.stack([jnp.concatenate(src_list), jnp.concatenate(dst_list)]).astype(jnp.int32)
    batch = jnp.repeat(jnp.arange(NUM_GRAPHS, dtype=jnp.int32), nodes_per_graph)

    key, kp = jax.random.split(key)
    layer_params, head_params = init_params(
        kp, IN_FEATURES, HIDDEN_DIM, HIDDEN_MLP_DIM, NUM_LAYERS, NUM_CLASSES)

    out = gnn_model_forward(x, edge_index, batch, NUM_GRAPHS, layer_params, head_params)
    out = jax.block_until_ready(out)

    ref = _ref_forward(x, edge_index, batch, NUM_GRAPHS, layer_params, head_params)
    assert out.shape == (NUM_GRAPHS, NUM_CLASSES)
    assert jnp.allclose(out, ref, rtol=1e-3, atol=1e-3), \
        f"mismatch, max abs err = {jnp.max(jnp.abs(out - ref))}"

    print("KERNEL_OK")
</pallas_src>

<mosaic_0001>
module attributes {stable_mosaic.version = 11 : i64} {
  func.func @_project_kernel(%arg0: i32, %arg1: memref<16x10xf32, #tpu.memory_space<vmem>>, %arg2: memref<10x128xf32, #tpu.memory_space<vmem>>, %arg3: memref<10x128xf32, #tpu.memory_space<vmem>>, %arg4: memref<1x128xf32, #tpu.memory_space<vmem>>, %arg5: memref<16x128xf32, #tpu.memory_space<vmem>>, %arg6: memref<16x128xf32, #tpu.memory_space<vmem>>) attributes {dimension_semantics = [#tpu.dimension_semantics<parallel>], iteration_bounds = array<i64: 1>, scalar_prefetch = 0 : i64, scratch_operands = 0 : i64, tpu.core_type = #tpu.core_type<tc>, window_params = [{transform_indices = @transform_0, window_bounds = array<i64: 16, 10>}, {pipeline_mode = #tpu.pipeline_mode<synchronous>, transform_indices = @transform_1, window_bounds = array<i64: 10, 128>}, {pipeline_mode = #tpu.pipeline_mode<synchronous>, transform_indices = @transform_2, window_bounds = array<i64: 10, 128>}, {pipeline_mode = #tpu.pipeline_mode<synchronous>, transform_indices = @transform_3, window_bounds = array<i64: 1, 128>}, {transform_indices = @transform_4, window_bounds = array<i64: 16, 128>}, {transform_indices = @transform_5, window_bounds = array<i64: 16, 128>}]} {
    %c0 = arith.constant 0 : index
    %c0_0 = arith.constant 0 : index
    %0 = vector.load %arg1[%c0, %c0_0] : memref<16x10xf32, #tpu.memory_space<vmem>>, vector<16x10xf32>
    %c0_1 = arith.constant 0 : index
    %c0_2 = arith.constant 0 : index
    %1 = vector.load %arg2[%c0_1, %c0_2] : memref<10x128xf32, #tpu.memory_space<vmem>>, vector<10x128xf32>
    %cst = arith.constant dense<0.000000e+00> : vector<16x128xf32>
    %2 = tpu.matmul %0, %1, %cst {dimension_numbers = #tpu.dot_dimension_numbers<[1], [0], [0], [1], [0, 0, 1, 1], [], []>} : vector<16x10xf32>, vector<10x128xf32>, vector<16x128xf32> -> vector<16x128xf32>
    %c0_3 = arith.constant 0 : index
    %c0_4 = arith.constant 0 : index
    %3 = vector.load %arg4[%c0_3, %c0_4] : memref<1x128xf32, #tpu.memory_space<vmem>>, vector<1x128xf32>
    %4 = vector.broadcast %3 : vector<1x128xf32> to vector<16x128xf32>
    %5 = arith.addf %2, %4 : vector<16x128xf32>
    %c0_5 = arith.constant 0 : index
    %c0_6 = arith.constant 0 : index
    %6 = vector.load %arg5[%c0_5, %c0_6] : memref<16x128xf32, #tpu.memory_space<vmem>>, vector<16x128xf32>
    tpu.vector_store %arg5[%c0_5, %c0_6], %5 {strides = array<i32>} : memref<16x128xf32, #tpu.memory_space<vmem>>, vector<16x128xf32>,
    %c0_7 = arith.constant 0 : index
    %c0_8 = arith.constant 0 : index
    %7 = vector.load %arg3[%c0_7, %c0_8] : memref<10x128xf32, #tpu.memory_space<vmem>>, vector<10x128xf32>
    %cst_9 = arith.constant dense<0.000000e+00> : vector<16x128xf32>
    %8 = tpu.matmul %0, %7, %cst_9 {dimension_numbers = #tpu.dot_dimension_numbers<[1], [0], [0], [1], [0, 0, 1, 1], [], []>} : vector<16x10xf32>, vector<10x128xf32>, vector<16x128xf32> -> vector<16x128xf32>
    %c0_10 = arith.constant 0 : index
    %c0_11 = arith.constant 0 : index
    %9 = vector.load %arg6[%c0_10, %c0_11] : memref<16x128xf32, #tpu.memory_space<vmem>>, vector<16x128xf32>
    tpu.vector_store %arg6[%c0_10, %c0_11], %8 {strides = array<i32>} : memref<16x128xf32, #tpu.memory_space<vmem>>, vector<16x128xf32>,
    return
  }
  func.func @transform_0(%arg0: i32) -> (i32, i32) {
    %c0_i32 = arith.constant 0 : i32
    %c0_i32_0 = arith.constant 0 : i32
    return %arg0, %c0_i32 : i32, i32
  }
  func.func @transform_1(%arg0: i32) -> (i32, i32) {
    %c0_i32 = arith.constant 0 : i32
    %c0_i32_0 = arith.constant 0 : i32
    %c0_i32_1 = arith.constant 0 : i32
    return %c0_i32, %c0_i32_0 : i32, i32
  }
  func.func @transform_2(%arg0: i32) -> (i32, i32) {
    %c0_i32 = arith.constant 0 : i32
    %c0_i32_0 = arith.constant 0 : i32
    %c0_i32_1 = arith.constant 0 : i32
    return %c0_i32, %c0_i32_0 : i32, i32
  }
  func.func @transform_3(%arg0: i32) -> (i32, i32) {
    %c0_i32 = arith.constant 0 : i32
    %c0_i32_0 = arith.constant 0 : i32
    %c0_i32_1 = arith.constant 0 : i32
    return %c0_i32, %c0_i32_0 : i32, i32
  }
  func.func @transform_4(%arg0: i32) -> (i32, i32) {
    %c0_i32 = arith.constant 0 : i32
    %c0_i32_0 = arith.constant 0 : i32
    return %arg0, %c0_i32 : i32, i32
  }
  func.func @transform_5(%arg0: i32) -> (i32, i32) {
    %c0_i32 = arith.constant 0 : i32
    %c0_i32_0 = arith.constant 0 : i32
    return %arg0, %c0_i32 : i32, i32
  }
}

</mosaic_0001>

<bundles_post_ra>
// kernel: tpu_custom_call.1
= control target key start
LH: loop header
LB: loop body
LE: loop exit
PB: predicated region body
PF: predicated region fallthrough
CT: control target
= control target key end

     0   :  { %11 = vsyncpa [#allocation3], 0  ;;  %s578_s0 = inlined_call_operand.hbm [shape: f32[16,10], index: 0, kind: input, shape index: {}]   ;;  %s579_s1 = inlined_call_operand.hbm [shape: f32[10,128], index: 1, kind: input, shape index: {}]   ;;  %s580_s2 = inlined_call_operand.hbm [shape: f32[10,128], index: 2, kind: input, shape index: {}]   ;;  %s581_s3 = inlined_call_operand.vmem [shape: f32[1,128], index: 3, kind: input, shape index: {}]   ;;  %s582_s4 = inlined_call_operand.hbm [shape: f32[16,128], index: 4, kind: output, shape index: {0}]   ;;  %s583_s5 = inlined_call_operand.hbm [shape: f32[16,128], index: 5, kind: output, shape index: {1}]  }
   0x1   :  { %12 = vsyncpa [#allocation6], 0 }
   0x2   :  { %13 = vsyncpa [#allocation4], 0 }
   0x3   :  { %14 = vsyncpa [#allocation10], 0  ;;  %s444_s18 = smov [#allocation5]   ;;  %s445_s20 = smov [#allocation2]  }
   0x4   :  { %s32_s19 = sshll.u32 %s444_s18, 4  ;;  %s20_s21 = sshll.u32 %s445_s20, 4  ;;  %s33_s19 = int_to_ptr.vmem [resolvable:$true] %s32_s19  ;;  %s482_s21 = int_to_ptr.vmem [resolvable:$true] %s20_s21 }
   0x5   :  { %s326_s24 = scalar_lea.hbm %s579_s1, 256 }
   0x6   :  { %p327_p0 = scmp.ne.s32.totalorder %s579_s1, %s326_s24  ;;  %p330_p1 = scmp.lt.u32.totalorder %s326_s24, %s579_s1 }
   0x8   :  { %p332_p2 = pnand %p330_p1, %p327_p0 }
   0xa   :  { %335 = shalt.err (!%p332_p2)
}
   0xb   :  { %s336_s29 = scalar_lea.vmem %s33_s19, 256  ;;  %p341_p4 = scmp.lt.s32.totalorder %s33_s19, %s33_s19 }
   0xc   :  { %p337_p3 = scmp.ne.s32.totalorder %s33_s19, %s336_s29  ;;  %p342_p5 = scmp.lt.s32.totalorder %s336_s29, %s336_s29 }
   0xe   :  { %p343_p6 = por %p342_p5, %p341_p4 }
  0x10   :  { %p344_p7 = pnand %p343_p6, %p337_p3 }
  0x12   :  { %347 = shalt.err (!%p344_p7)
}
  0x13   :  { %s446_s30 = smov 128   ;;  %s447_s6 = smov 8  }
  0x14   :  { %38 = dma.hbm_to_vmem [thread:$0]  %s579_s1, 256, %s33_s19, [#allocation6], %s446_s30, %s446_s30, %s447_s6  }
  0x15   :  { %s348_s11 = scalar_lea.hbm %s578_s0, 256 }
  0x16   :  { %p349_p8 = scmp.ne.s32.totalorder %s578_s0, %s348_s11  ;;  %p352_p9 = scmp.lt.u32.totalorder %s348_s11, %s578_s0 }
  0x18   :  { %p354_p10 = pnand %p352_p9, %p349_p8 }
  0x1a   :  { %357 = shalt.err (!%p354_p10)
}
  0x1b   :  { %s358_s16 = scalar_lea.vmem %s482_s21, 256  ;;  %p363_p12 = scmp.lt.s32.totalorder %s482_s21, %s482_s21 }
  0x1c   :  { %p359_p11 = scmp.ne.s32.totalorder %s482_s21, %s358_s16  ;;  %p364_p13 = scmp.lt.s32.totalorder %s358_s16, %s358_s16 }
  0x1e   :  { %p365_p0 = por %p364_p13, %p363_p12 }
  0x20   :  { %p366_p1 = pnand %p365_p0, %p359_p11 }
  0x22   :  { %369 = shalt.err (!%p366_p1)
}
  0x23   :  { %26 = dma.hbm_to_vmem [thread:$0]  %s578_s0, 256, %s482_s21, [#allocation3], %s446_s30, %s446_s30, %s447_s6  }
  0x24   :  { %s448_s18 = smov [#allocation7]   ;;  %s370_s23 = scalar_lea.hbm %s580_s2, 256 }
  0x25   :  { %s44_s19 = sshll.u32 %s448_s18, 4  ;;  %p371_p2 = scmp.ne.s32.totalorder %s580_s2, %s370_s23  ;;  %s45_s19 = int_to_ptr.vmem [resolvable:$true] %s44_s19 }
  0x26   :  { %p374_p3 = scmp.lt.u32.totalorder %s370_s23, %s580_s2 }
  0x28   :  { %p376_p4 = pnand %p374_p3, %p371_p2 }
  0x2a   :  { %379 = shalt.err (!%p376_p4)
}
  0x2b   :  { %s380_s28 = scalar_lea.vmem %s45_s19, 256  ;;  %p385_p6 = scmp.lt.s32.totalorder %s45_s19, %s45_s19 }
  0x2c   :  { %p381_p5 = scmp.ne.s32.totalorder %s45_s19, %s380_s28  ;;  %p386_p7 = scmp.lt.s32.totalorder %s380_s28, %s380_s28 }
  0x2e   :  { %p387_p8 = por %p386_p7, %p385_p6 }
  0x30   :  { %p388_p9 = pnand %p387_p8, %p381_p5 }
  0x32   :  { %391 = shalt.err (!%p388_p9)
}
  0x33   :  { %50 = dma.hbm_to_vmem [thread:$0]  %s580_s2, 256, %s45_s19, [#allocation6], %s446_s30, %s446_s30, %s447_s6  }
  0x34   :  { %436 = dma.done.wait [#allocation3], 256  }
  0x35   :  { %437 = vsyncadd [#allocation3], 4294967040 }
  0x36   :  { %438 = dma.done.wait [#allocation6], 512  }
  0x37   :  { %439 = vsyncadd [#allocation6], 4294966784  ;;  %vm80_vm0 = vcmask 1041408   ;;  %vm449_vm1 = vmmov 1   ;;  %vm73_vm3 = vcmask 80896   ;;  %v64_v0 = vld [vmem:[#allocation5] sm:$0xff] }
  0x38   :  { %vm307_vm2 = vmpackc.low %vm80_vm0, %vm449_vm1  ;;  %v65_v1 = vld [vmem:[#allocation5 + $0x8] sm:$0x3]  ;;  %v161_v2 = vld [vmem:[#allocation7] sm:$0xff]  ;;  %s450_s7 = smov [#allocation9]   ;;  %s451_s9 = smov [#allocation8]  }
  0x39   :  { %v306_v3 = vpack.c.bf16 %v65_v1, %v64_v0  ;;  %v162_v4 = vld [vmem:[#allocation7 + $0x8] sm:$0x3]  ;;  %v62_v5 = vld [vmem:[#allocation2] sm:$0xff]  ;;  %s260_s8 = sshll.u32 %s450_s7, 4  ;;  %s248_s10 = sshll.u32 %s451_s9, 4  ;;  %s261_s8 = int_to_ptr.vmem [resolvable:$true] %s260_s8  ;;  %s541_s10 = int_to_ptr.vmem [resolvable:$true] %s248_s10 }
  0x3a   :  { %v312_v6 = vpack.c.bf16 %v162_v4, %v161_v2  ;;  %296 = vmatprep.mubr.msk.f32.mxu0 %vm73_vm3, %v62_v5  ;;  %303 = vmatprep.mubr.msk.f32.mxu1 %vm73_vm3, %v62_v5  ;;  %v63_v7 = vld [vmem:[#allocation2 + $0x8] sm:$0xff]  ;;  %v277_v8 = vld [vmem:[%s581_s3] ss:$0 sm:$0xff]  ;;  %s392_s11 = scalar_lea.vmem %s261_s8, 256  ;;  %p397_p11 = scmp.lt.s32.totalorder %s261_s8, %s261_s8 }
  0x3b   :  { %308 = vmatprep.subr.msk.bf16.mxu0 %vm307_vm2, %v306_v3  ;;  %p393_p10 = scmp.ne.s32.totalorder %s261_s8, %s392_s11  ;;  %p398_p12 = scmp.lt.s32.totalorder %s392_s11, %s392_s11 }
  0x3c   :  { %311 = vmatpush3.bf16.msk.msra.mxu0 %vm307_vm2, %v306_v3  ;;  %314 = vmatprep.subr.msk.bf16.mxu1 %vm307_vm2, %v312_v6 }
  0x3d   :  { %317 = vmatpush3.bf16.msk.msra.mxu1 %vm307_vm2, %v312_v6  ;;  %p399_p13 = por %p398_p12, %p397_p11 }
  0x3f   :  { %297 = vmatmul.mubr.msk.f32.vlgmr.msra.gmra.mrb[0].mxu0 %vm73_vm3, %v63_v7  ;;  %p400_p0 = pnand %p399_p13, %p393_p10 }
  0x40   :  { %304 = vmatmul.mubr.msk.f32.vlgmr.msra.gmra.mrb[0].mxu1 %vm73_vm3, %v63_v7 }
 0x112   :  { %v298_v9 = vpop.f32.mrb[0].mxu0 }
 0x113   :  { %v156_v10 = vadd.f32 %v298_v9, %v277_v8  ;;  %v150_v11 = vpop.f32.mrb[1].mxu0  ;;  %v305_v12 = vpop.f32.mrb[0].mxu1 }
 0x114   :  { %v151_v13 = vadd.f32 %v277_v8, %v150_v11  ;;  %242 = vst [vmem:[#allocation9 + $0x8] sm:$0xff] %v305_v12  ;;  %v232_v14 = vpop.f32.mrb[1].mxu1 }
 0x115   :  { %160 = vst [vmem:[#allocation8 + $0x8] sm:$0xff] %v156_v10  ;;  %241 = vst [vmem:[#allocation9] sm:$0xff] %v232_v14 }
 0x116   :  { %159 = vst [vmem:[#allocation8] sm:$0xff] %v151_v13 }
 0x117   :  { %403 = shalt.err (!%p400_p0)
}
 0x118   :  { %s404_s13 = scalar_lea.hbm %s583_s5, 256 }
 0x119   :  { %p405_p1 = scmp.ne.s32.totalorder %s583_s5, %s404_s13  ;;  %p408_p2 = scmp.lt.u32.totalorder %s404_s13, %s583_s5 }
 0x11b   :  { %p410_p3 = pnand %p408_p2, %p405_p1 }
 0x11d   :  { %413 = shalt.err (!%p410_p3)
}
 0x11e   :  { %266 = dma.vmem_to_hbm [thread:$0]  %s261_s8, 256, %s583_s5, [#allocation10], %s446_s30, %s446_s30, %s447_s6  }
 0x11f   :  { %s414_s19 = scalar_lea.vmem %s541_s10, 256  ;;  %p419_p5 = scmp.lt.s32.totalorder %s541_s10, %s541_s10 }
 0x120   :  { %p415_p4 = scmp.ne.s32.totalorder %s541_s10, %s414_s19  ;;  %p420_p6 = scmp.lt.s32.totalorder %s414_s19, %s414_s19 }
 0x122   :  { %p421_p7 = por %p420_p6, %p419_p5 }
 0x124   :  { %p422_p8 = pnand %p421_p7, %p415_p4 }
 0x126   :  { %425 = shalt.err (!%p422_p8)
}
 0x127   :  { %s426_s23 = scalar_lea.hbm %s582_s4, 256 }
 0x128   :  { %p427_p9 = scmp.ne.s32.totalorder %s582_s4, %s426_s23  ;;  %p430_p10 = scmp.lt.u32.totalorder %s426_s23, %s582_s4 }
 0x12a   :  { %p432_p11 = pnand %p430_p10, %p427_p9 }
 0x12c   :  { %435 = shalt.err (!%p432_p11)
}
 0x12d   :  { %254 = dma.vmem_to_hbm [thread:$0]  %s541_s10, 256, %s582_s4, [#allocation4], %s446_s30, %s446_s30, %s447_s6  }
 0x12e   :  { %440 = dma.done.wait [#allocation4], 256  }
 0x12f   :  { %441 = vsyncadd [#allocation4], 4294967040 }
 0x130   :  { %442 = dma.done.wait [#allocation10], 256  }
 0x131   :  { %443 = vsyncadd [#allocation10], 4294967040 }
 0x132   :  { %273 = vsyncpa [#allocation3], 1 }
 0x133   :  { %274 = vsyncpa [#allocation6], 1 }
 0x134   :  { %275 = vsyncpa [#allocation4], 1 }
 0x135   :  { %276 = vsyncpa [#allocation10], 1 }

</bundles_post_ra>
